<compile_context>
chip_gen: v7x
topology: tpu7x:2x2x1
jax: 0.10.0
libtpu: 0.0.40
codegen_flags: <defaults>
</compile_context>

<pallas_src>
import jax
import jax.numpy as jnp
from jax.experimental import pallas as pl
from jax.experimental.pallas import tpu as pltpu


# ---- packed-parameter layout (rows, 128 lanes); row offsets 8-aligned ------
W1T_ROW = 0     # rows [0,   64) lanes [0, 2)  : w1^T            (64, 2)
B1_ROW  = 64    # rows [64, 128) lanes [0, 1)  : b1^T            (64, 1)
W2T_ROW = 128   # rows [128,160) lanes [0,64)  : w2^T            (32, 64)
B2_ROW  = 160   # rows [160,192) lanes [0, 1)  : b2^T            (32, 1)
W3T_ROW = 192   # rows [192,208) lanes [0,32)  : w3^T            (16, 32)
B3_ROW  = 208   # rows [208,224) lanes [0, 1)  : b3^T            (16, 1)
WFT_ROW = 224   # rows [224,226) lanes [0,16)  : (w4 @ wf)^T     (2, 16)
BFT_ROW = 232   # rows [232,234) lanes [0, 1)  : (b4 @ wf + bf)^T (2, 1)
PACK_ROWS = 240
PACK_LANES = 128


def mlp_gaze_kernel(params_ref, act_ref, out_ref):
    # Activations are transposed: features on sublanes, batch on lanes.
    x0 = act_ref[0:1, :]                                       # (1, TB) cp[:,0]
    x1 = act_ref[1:2, :]                                       # (1, TB) cp[:,1]
    head_t = act_ref[2:4, :]                                   # (2, TB)

    # Layer 1 (2 -> 64) on the VPU: K=2 contraction as broadcasted mul-adds.
    w1t = params_ref[W1T_ROW:W1T_ROW + 64, 0:2]                # (64, 2)
    b1 = params_ref[B1_ROW:B1_ROW + 64, 0:1]                   # (64, 1)
    h = w1t[:, 0:1] * x0 + w1t[:, 1:2] * x1 + b1               # (64, TB)
    h = jnp.maximum(h, 0.0)

    # Layer 2 (64 -> 32) on the MXU: (32,64) @ (64,TB).
    w2t = params_ref[W2T_ROW:W2T_ROW + 32, 0:64]               # (32, 64)
    b2 = params_ref[B2_ROW:B2_ROW + 32, 0:1]                   # (32, 1)
    h = jnp.dot(w2t, h, preferred_element_type=jnp.float32) + b2
    h = jnp.maximum(h, 0.0)

    # Layer 3 (32 -> 16) on the MXU: (16,32) @ (32,TB).
    w3t = params_ref[W3T_ROW:W3T_ROW + 16, 0:32]               # (16, 32)
    b3 = params_ref[B3_ROW:B3_ROW + 16, 0:1]                   # (16, 1)
    h = jnp.dot(w3t, h, preferred_element_type=jnp.float32) + b3
    h = jnp.maximum(h, 0.0)

    # Fused layers 4+fc (16 -> 8 -> 2 folded into 16 -> 2), plus head residual.
    wft = params_ref[WFT_ROW:WFT_ROW + 2, 0:16]                # (2, 16)
    bft = params_ref[BFT_ROW:BFT_ROW + 2, 0:1]                 # (2, 1)
    out = jnp.dot(wft, h, preferred_element_type=jnp.float32) + bft
    out_ref[...] = out + head_t                                # (2, TB)


def make_params(key):
    """init_weights: Linear weights ~ N(0, 0.2), biases = 0.

    Weights stored as (in_features, out_features) so the reference forward is
    x @ W + b (equivalent to PyTorch x @ W.T with W:(out,in))."""
    dims = [(2, 64), (64, 32), (32, 16), (16, 8), (8, 2)]
    params = []
    for (d_in, d_out) in dims:
        key, sub = jax.random.split(key)
        w = 0.2 * jax.random.normal(sub, (d_in, d_out), dtype=jnp.float32)
        b = jnp.zeros((1, d_out), dtype=jnp.float32)
        params.extend([w, b])
    return params


def pack_params(params):
    """One-time init: fold the last two linears, transpose all weights, and
    pack everything into a single (240, 128) f32 VMEM slab."""
    w1, b1, w2, b2, w3, b3, w4, b4, wf, bf = params
    wf_fused = w4 @ wf                      # (16, 2)
    bf_fused = b4 @ wf + bf                 # (1, 2)

    packed = jnp.zeros((PACK_ROWS, PACK_LANES), jnp.float32)
    packed = packed.at[W1T_ROW:W1T_ROW + 64, 0:2].set(w1.T)
    packed = packed.at[B1_ROW:B1_ROW + 64, 0:1].set(b1.T)
    packed = packed.at[W2T_ROW:W2T_ROW + 32, 0:64].set(w2.T)
    packed = packed.at[B2_ROW:B2_ROW + 32, 0:1].set(b2.T)
    packed = packed.at[W3T_ROW:W3T_ROW + 16, 0:32].set(w3.T)
    packed = packed.at[B3_ROW:B3_ROW + 16, 0:1].set(b3.T)
    packed = packed.at[WFT_ROW:WFT_ROW + 2, 0:16].set(wf_fused.T)
    packed = packed.at[BFT_ROW:BFT_ROW + 2, 0:1].set(bf_fused.T)
    return packed


def _choose_tile(B):
    """Batch tile on the lane axis.  Full batch when small; for large B use a
    256-lane-aligned tile capped at 4096 with >= 2 grid steps (v7x megacore)."""
    if B <= 1024:
        return B
    half = -(-B // 2)                       # ceil(B / 2)
    tb = ((half + 255) // 256) * 256
    return min(4096, tb)


@jax.jit
def mlp_gaze_net(cpvalue, head, packed):
    """cpvalue: (B, 2), head: (B, 2), packed: (240, 128) pre-packed params."""
    B = cpvalue.shape[0]
    # Fuse both activation streams into one lane-dense (4, B) input.
    act = jnp.concatenate([cpvalue.T, head.T], axis=0)          # (4, B)

    TB = _choose_tile(B)
    grid = (pl.cdiv(B, TB),)

    out_t = pl.pallas_call(
        mlp_gaze_kernel,
        out_shape=jax.ShapeDtypeStruct((2, B), jnp.float32),
        grid=grid,
        in_specs=[
            # Weight slab stays resident in VMEM across all grid steps.
            pl.BlockSpec((PACK_ROWS, PACK_LANES), lambda i: (0, 0)),
            pl.BlockSpec((4, TB), lambda i: (0, i)),             # fused cp+head
        ],
        out_specs=pl.BlockSpec((2, TB), lambda i: (0, i)),
        compiler_params=pltpu.CompilerParams(
            dimension_semantics=("parallel",)),
    )(packed, act)

    return out_t.T                                               # (B, 2)


def reference_forward(cpvalue, head, params):
    w1, b1, w2, b2, w3, b3, w4, b4, wf, bf = params
    h = jnp.maximum(cpvalue @ w1 + b1, 0.0)
    h = jnp.maximum(h @ w2 + b2, 0.0)
    h = jnp.maximum(h @ w3 + b3, 0.0)
    feat = h @ w4 + b4
    return feat @ wf + bf + head


if __name__ == "__main__":
    key = jax.random.PRNGKey(0)
    k_cp, k_head, k_params = jax.random.split(key, 3)

    params = make_params(k_params)
    packed = jax.block_until_ready(pack_params(params))  # one-time init

    ok = True
    for B in (8, 200):
        kc, kh = jax.random.split(jax.random.fold_in(k_cp, B))
        cpvalue = jax.random.normal(kc, (B, 2), dtype=jnp.float32)
        head = jax.random.normal(kh, (B, 2), dtype=jnp.float32)

        out = jax.block_until_ready(mlp_gaze_net(cpvalue, head, packed))
        ref = reference_forward(cpvalue, head, params)

        ok = ok and out.shape == (B, 2)
        ok = ok and bool(jnp.allclose(out, ref, atol=1e-5, rtol=1e-5))

    assert ok
    print("KERNEL_OK")
</pallas_src>

<mosaic_0001>
module attributes {stable_mosaic.version = 11 : i64} {
  func.func @mlp_gaze_kernel(%arg0: i32, %arg1: memref<240x128xf32, #tpu.memory_space<vmem>>, %arg2: memref<4x8xf32, #tpu.memory_space<vmem>>, %arg3: memref<2x8xf32, #tpu.memory_space<vmem>>) attributes {dimension_semantics = [#tpu.dimension_semantics<parallel>], iteration_bounds = array<i64: 1>, scalar_prefetch = 0 : i64, scratch_operands = 0 : i64, tpu.core_type = #tpu.core_type<tc>, window_params = [{pipeline_mode = #tpu.pipeline_mode<synchronous>, transform_indices = @transform_0, window_bounds = array<i64: 240, 128>}, {transform_indices = @transform_1, window_bounds = array<i64: 4, 8>}, {transform_indices = @transform_2, window_bounds = array<i64: 2, 8>}]} {
    %c0 = arith.constant 0 : index
    %c0_0 = arith.constant 0 : index
    %0 = vector.load %arg2[%c0, %c0_0] : memref<4x8xf32, #tpu.memory_space<vmem>>, vector<1x8xf32>
    %c1 = arith.constant 1 : index
    %c0_1 = arith.constant 0 : index
    %1 = vector.load %arg2[%c1, %c0_1] : memref<4x8xf32, #tpu.memory_space<vmem>>, vector<1x8xf32>
    %c2 = arith.constant 2 : index
    %c0_2 = arith.constant 0 : index
    %2 = vector.load %arg2[%c2, %c0_2] : memref<4x8xf32, #tpu.memory_space<vmem>>, vector<2x8xf32>
    %c0_3 = arith.constant 0 : index
    %c0_4 = arith.constant 0 : index
    %3 = vector.load %arg1[%c0_3, %c0_4] : memref<240x128xf32, #tpu.memory_space<vmem>>, vector<64x2xf32>
    %c64 = arith.constant 64 : index
    %c0_5 = arith.constant 0 : index
    %4 = vector.load %arg1[%c64, %c0_5] : memref<240x128xf32, #tpu.memory_space<vmem>>, vector<64x1xf32>
    %5 = vector.extract_strided_slice %3 {offsets = [0, 0], sizes = [64, 1], strides = [1, 1]} : vector<64x2xf32> to vector<64x1xf32>
    %6 = vector.broadcast %5 : vector<64x1xf32> to vector<64x8xf32>
    %7 = vector.broadcast %0 : vector<1x8xf32> to vector<64x8xf32>
    %8 = arith.mulf %6, %7 : vector<64x8xf32>
    %9 = vector.extract_strided_slice %3 {offsets = [0, 1], sizes = [64, 1], strides = [1, 1]} : vector<64x2xf32> to vector<64x1xf32>
    %10 = vector.broadcast %9 : vector<64x1xf32> to vector<64x8xf32>
    %11 = vector.broadcast %1 : vector<1x8xf32> to vector<64x8xf32>
    %12 = arith.mulf %10, %11 : vector<64x8xf32>
    %13 = arith.addf %8, %12 : vector<64x8xf32>
    %14 = vector.broadcast %4 : vector<64x1xf32> to vector<64x8xf32>
    %15 = arith.addf %13, %14 : vector<64x8xf32>
    %cst = arith.constant 0.000000e+00 : f32
    %16 = vector.broadcast %cst : f32 to vector<64x8xf32>
    %17 = arith.maximumf %15, %16 : vector<64x8xf32>
    %c128 = arith.constant 128 : index
    %c0_6 = arith.constant 0 : index
    %18 = vector.load %arg1[%c128, %c0_6] : memref<240x128xf32, #tpu.memory_space<vmem>>, vector<32x64xf32>
    %c160 = arith.constant 160 : index
    %c0_7 = arith.constant 0 : index
    %19 = vector.load %arg1[%c160, %c0_7] : memref<240x128xf32, #tpu.memory_space<vmem>>, vector<32x1xf32>
    %cst_8 = arith.constant dense<0.000000e+00> : vector<32x8xf32>
    %20 = tpu.matmul %18, %17, %cst_8 {dimension_numbers = #tpu.dot_dimension_numbers<[1], [0], [0], [1], [0, 0, 1, 1], [], []>} : vector<32x64xf32>, vector<64x8xf32>, vector<32x8xf32> -> vector<32x8xf32>
    %21 = vector.broadcast %19 : vector<32x1xf32> to vector<32x8xf32>
    %22 = arith.addf %20, %21 : vector<32x8xf32>
    %cst_9 = arith.constant 0.000000e+00 : f32
    %23 = vector.broadcast %cst_9 : f32 to vector<32x8xf32>
    %24 = arith.maximumf %22, %23 : vector<32x8xf32>
    %c192 = arith.constant 192 : index
    %c0_10 = arith.constant 0 : index
    %25 = vector.load %arg1[%c192, %c0_10] : memref<240x128xf32, #tpu.memory_space<vmem>>, vector<16x32xf32>
    %c208 = arith.constant 208 : index
    %c0_11 = arith.constant 0 : index
    %26 = vector.load %arg1[%c208, %c0_11] : memref<240x128xf32, #tpu.memory_space<vmem>>, vector<16x1xf32>
    %cst_12 = arith.constant dense<0.000000e+00> : vector<16x8xf32>
    %27 = tpu.matmul %25, %24, %cst_12 {dimension_numbers = #tpu.dot_dimension_numbers<[1], [0], [0], [1], [0, 0, 1, 1], [], []>} : vector<16x32xf32>, vector<32x8xf32>, vector<16x8xf32> -> vector<16x8xf32>
    %28 = vector.broadcast %26 : vector<16x1xf32> to vector<16x8xf32>
    %29 = arith.addf %27, %28 : vector<16x8xf32>
    %cst_13 = arith.constant 0.000000e+00 : f32
    %30 = vector.broadcast %cst_13 : f32 to vector<16x8xf32>
    %31 = arith.maximumf %29, %30 : vector<16x8xf32>
    %c224 = arith.constant 224 : index
    %c0_14 = arith.constant 0 : index
    %32 = vector.load %arg1[%c224, %c0_14] : memref<240x128xf32, #tpu.memory_space<vmem>>, vector<2x16xf32>
    %c232 = arith.constant 232 : index
    %c0_15 = arith.constant 0 : index
    %33 = vector.load %arg1[%c232, %c0_15] : memref<240x128xf32, #tpu.memory_space<vmem>>, vector<2x1xf32>
    %cst_16 = arith.constant dense<0.000000e+00> : vector<2x8xf32>
    %34 = tpu.matmul %32, %31, %cst_16 {dimension_numbers = #tpu.dot_dimension_numbers<[1], [0], [0], [1], [0, 0, 1, 1], [], []>} : vector<2x16xf32>, vector<16x8xf32>, vector<2x8xf32> -> vector<2x8xf32>
    %35 = vector.broadcast %33 : vector<2x1xf32> to vector<2x8xf32>
    %36 = arith.addf %34, %35 : vector<2x8xf32>
    %37 = arith.addf %36, %2 : vector<2x8xf32>
    %c0_17 = arith.constant 0 : index
    %c0_18 = arith.constant 0 : index
    %38 = vector.load %arg3[%c0_17, %c0_18] : memref<2x8xf32, #tpu.memory_space<vmem>>, vector<2x8xf32>
    tpu.vector_store %arg3[%c0_17, %c0_18], %37 {strides = array<i32>} : memref<2x8xf32, #tpu.memory_space<vmem>>, vector<2x8xf32>,
    return
  }
  func.func @transform_0(%arg0: i32) -> (i32, i32) {
    %c0_i32 = arith.constant 0 : i32
    %c0_i32_0 = arith.constant 0 : i32
    %c0_i32_1 = arith.constant 0 : i32
    return %c0_i32, %c0_i32_0 : i32, i32
  }
  func.func @transform_1(%arg0: i32) -> (i32, i32) {
    %c0_i32 = arith.constant 0 : i32
    %c0_i32_0 = arith.constant 0 : i32
    return %c0_i32, %arg0 : i32, i32
  }
  func.func @transform_2(%arg0: i32) -> (i32, i32) {
    %c0_i32 = arith.constant 0 : i32
    %c0_i32_0 = arith.constant 0 : i32
    return %c0_i32, %arg0 : i32, i32
  }
}

</mosaic_0001>

<bundles_post_ra>
// kernel: mlp_gaze_net.1
= control target key start
LH: loop header
LB: loop body
LE: loop exit
PB: predicated region body
PF: predicated region fallthrough
CT: control target
= control target key end

     0   :  { %7 = vsyncpa [#allocation3], 0  ;;  %s759_s0 = inlined_call_operand.hbm [shape: f32[240,128], index: 0, kind: input, shape index: {}]   ;;  %s760_s1 = inlined_call_operand.vmem [shape: f32[4,8], index: 1, kind: input, shape index: {}]   ;;  %s761_s2 = inlined_call_operand.hbm [shape: f32[2,8], index: 2, kind: output, shape index: {}]  }
   0x1   :  { %8 = vsyncpa [#allocation4], 0  ;;  %s696_s9 = smov [#allocation2]   ;;  %s648_s13 = scalar_lea.hbm %s759_s0, 3840 }
   0x2   :  { %s14_s10 = sshll.u32 %s696_s9, 4  ;;  %p649_p0 = scmp.ne.s32.totalorder %s759_s0, %s648_s13  ;;  %s15_s10 = int_to_ptr.vmem [resolvable:$true] %s14_s10 }
   0x3   :  { %p652_p1 = scmp.lt.u32.totalorder %s648_s13, %s759_s0 }
   0x5   :  { %p654_p2 = pnand %p652_p1, %p649_p0 }
   0x7   :  { %657 = shalt.err (!%p654_p2)
}
   0x8   :  { %s658_s18 = scalar_lea.vmem %s15_s10, 3840  ;;  %p663_p4 = scmp.lt.s32.totalorder %s15_s10, %s15_s10 }
   0x9   :  { %p659_p3 = scmp.ne.s32.totalorder %s15_s10, %s658_s18  ;;  %p664_p5 = scmp.lt.s32.totalorder %s658_s18, %s658_s18 }
   0xb   :  { %p665_p6 = por %p664_p5, %p663_p4 }
   0xd   :  { %p666_p7 = pnand %p665_p6, %p659_p3 }
   0xf   :  { %669 = shalt.err (!%p666_p7)
}
  0x10   :  { %s697_s19 = smov 128   ;;  %s698_s20 = smov 8  }
  0x11   :  { %20 = dma.hbm_to_vmem [thread:$0]  %s759_s0, 3840, %s15_s10, [#allocation3], %s697_s19, %s697_s19, %s698_s20  }
  0x12   :  { %692 = dma.done.wait [#allocation3], 3840  }
  0x13   :  { %693 = vsyncadd [#allocation3], 4294963456  ;;  %v699_v0 = vmov 1   ;;  %v31_v1 = vld [vmem:[#allocation2 + $0x10] sm:$0xff]  ;;  %v29_v2 = vld [vmem:[#allocation2] sm:$0xff]  ;;  %v700_v7 = vmov 0  }
  0x14   :  { %640 = vset.pattern.permute.xlu0 %v699_v0  ;;  %638 = vset.pattern.permute.xlu1 %v699_v0  ;;  %v33_v3 = vld [vmem:[#allocation2 + $0x20] sm:$0xff]  ;;  %v30_v4 = vld [vmem:[#allocation2 + $0x8] sm:$0xff]  ;;  %v35_v5 = vld [vmem:[#allocation2 + $0x30] sm:$0xff]  ;;  %vm233_vm0 = vcmask 523264   ;;  %vm349_vm1 = vcmask 261120   ;;  %vm702_vm2 = vmmov 0  }
  0x15   :  { %106 = vperm.xlu0 %640, %v31_v1   ;;  %98 = vperm.xlu1 %638, %v29_v2   ;;  %v32_v6 = vld [vmem:[#allocation2 + $0x18] sm:$0xff]  ;;  %v37_v8 = vld [vmem:[#allocation2 + $0x40] sm:$0xff]  ;;  %v38_v9 = vld [vmem:[#allocation2 + $0x48] sm:$0xff]  ;;  %vm440_vm3 = vcmask 130048   ;;  %s704_s28 = smov [#allocation5]   ;;  %vm515_vm4 = vcmask 58368  }
  0x16   :  { %v34_v10 = vld [vmem:[#allocation2 + $0x28] sm:$0xff]  ;;  %v40_v11 = vld [vmem:[#allocation2 + $0x58] sm:$0xff]  ;;  %v209_v13 = vld [vmem:[#allocation2 + $0xa0] sm:$0xff]  ;;  %s523_s29 = sshll.u32 %s704_s28, 4  ;;  %s524_s29 = int_to_ptr.vmem [resolvable:$true] %s523_s29 }
  0x17   :  { %v42_v12 = vld [vmem:[#allocation2 + $0x68] sm:$0xff]  ;;  %v39_v14 = vld [vmem:[#allocation2 + $0x50] sm:$0xff]  ;;  %v36_v17 = vld [vmem:[#allocation2 + $0x38] sm:$0xff]  ;;  %s670_s30 = scalar_lea.vmem %s524_s29, 32  ;;  %p675_p9 = scmp.lt.s32.totalorder %s524_s29, %s524_s29 }
  0x18   :  { %v211_v15 = vld [vmem:[#allocation2 + $0xb0] sm:$0xff]  ;;  %v434_v18 = vld [vmem:[#allocation2 + $0xe8] sm:$0x3]  ;;  %v41_v19 = vld [vmem:[#allocation2 + $0x60] sm:$0xff]  ;;  %p671_p8 = scmp.ne.s32.totalorder %s524_s29, %s670_s30  ;;  %p676_p10 = scmp.lt.s32.totalorder %s670_s30, %s670_s30 }
  0x19   :  { %114 = vperm.xlu0 %640, %v33_v3   ;;  %102 = vperm.xlu1 %638, %v30_v4   ;;  %v337_v16 = vld [vmem:[#allocation2 + $0xd0] sm:$0xff]  ;;  %v44_v21 = vld [vmem:[#allocation2 + $0x78] sm:$0xff]  ;;  %v210_v22 = vld [vmem:[#allocation2 + $0xa8] sm:$0xff] }
  0x1a   :  { %v43_v20 = vld [vmem:[#allocation2 + $0x70] sm:$0xff]  ;;  %v212_v23 = vld [vmem:[#allocation2 + $0xb8] sm:$0xff]  ;;  %v205_v24 = vld [vmem:[#allocation2 + $0x80] sm:$0xff]  ;;  %p677_p11 = por %p676_p10, %p675_p9 }
  0x1b   :  { %578 = vmatprep.mubr.msk.f32.mxu0 %vm233_vm0, %v205_v24  ;;  %v338_v25 = vld [vmem:[#allocation2 + $0xd8] sm:$0xff]  ;;  %v533_v34 = vld [vmem:[%s760_s1 + $0x1] ss:$0 sm:$0xff]  ;;  %v532_v35 = vld [vmem:[%s760_s1] ss:$0 sm:$0xff] }
  0x1c   :  { %p678_p12 = pnand %p677_p11, %p671_p8 }
  0x1d   :  { %122 = vperm.xlu0 %640, %v35_v5   ;;  %639 = vset.pattern.permute.xlu1 %v700_v7 }
  0x1e   :  { %62 = vperm.xlu1 %639, %v32_v6  }
  0x21   :  { %645 = vset.pattern.permute.xlu0 %v700_v7 }
  0x22   :  { %47 = vperm.xlu0 %645, %v29_v2   ;;  %641 = vset.pattern.permute.xlu1 %v699_v0 }
  0x23   :  { %110 = vperm.xlu1 %641, %v32_v6  }
  0x26   :  { %52 = vperm.xlu0 %645, %v30_v4  }
  0x27   :  { %642 = vset.pattern.permute.xlu1 %v700_v7 }
  0x28   :  { %151 = vperm.xlu1 %642, %v37_v8  }
  0x2a   :  { %57 = vperm.xlu0 %645, %v31_v1  }
  0x2c   :  { %67 = vperm.xlu1 %642, %v33_v3  }
  0x2e   :  { %156 = vperm.xlu0 %645, %v38_v9  }
  0x30   :  { %72 = vperm.xlu1 %642, %v34_v10  }
  0x32   :  { %166 = vperm.xlu0 %645, %v40_v11  }
  0x34   :  { %643 = vset.pattern.permute.xlu1 %v699_v0 }
  0x35   :  { %118 = vperm.xlu1 %643, %v34_v10  }
  0x36   :  { %176 = vperm.xlu0 %645, %v42_v12  }
  0x39   :  { %644 = vset.pattern.permute.xlu1 %v700_v7 }
  0x3a   :  { %215 = vperm.xlu0 %645, %v209_v13   ;;  %161 = vperm.xlu1 %644, %v39_v14  }
  0x3e   :  { %225 = vperm.xlu0 %645, %v211_v15   ;;  %77 = vperm.xlu1 %644, %v35_v5  }
  0x42   :  { %341 = vperm.xlu0 %645, %v337_v16   ;;  %82 = vperm.xlu1 %644, %v36_v17  }
  0x46   :  { %437 = vperm.xlu0 %645, %v434_v18   ;;  %646 = vset.pattern.permute.xlu1 %v699_v0 }
  0x47   :  { %126 = vperm.xlu1 %646, %v36_v17  }
  0x4b   :  { %647 = vset.pattern.permute.xlu1 %v700_v7 }
  0x4c   :  { %171 = vperm.xlu1 %647, %v41_v19  }
  0x50   :  { %181 = vperm.xlu1 %647, %v43_v20  }
  0x54   :  { %186 = vperm.xlu1 %647, %v44_v21  }
  0x58   :  { %220 = vperm.xlu1 %647, %v210_v22  }
  0x5c   :  { %230 = vperm.xlu1 %647, %v212_v23  }
  0x60   :  { %346 = vperm.xlu1 %647, %v338_v25  }
  0x94   :  { %v99_v26 = vpop.permute.xlu1 %98  ;;  %v107_v27 = vpop.permute.xlu0 %106 }
  0x95   :  { %v133_v39 = vmul.f32 %v533_v34, %v99_v26  ;;  %v135_v54 = vmul.f32 %v533_v34, %v107_v27 }
  0x98   :  { %v103_v28 = vpop.permute.xlu1 %102  ;;  %v115_v29 = vpop.permute.xlu0 %114 }
  0x99   :  { %v134_v42 = vmul.f32 %v533_v34, %v103_v28  ;;  %v137_v7 = vmul.f32 %v533_v34, %v115_v29 }
  0x9c   :  { %v123_v30 = vpop.permute.xlu0 %122 }
  0x9d   :  { %v63_v31 = vpop.permute.xlu1 %62  ;;  %v139_v17 = vmul.f32 %v533_v34, %v123_v30  ;;  %v207_v30 = vld [vmem:[#allocation2 + $0x90] sm:$0xff] }
  0x9e   :  { %v92_v55 = vmul.f32 %v532_v35, %v63_v31 }
  0xa1   :  { %v48_v32 = vpop.permute.xlu0 %47 }
  0xa2   :  { %v111_v33 = vpop.permute.xlu1 %110  ;;  %v89_v37 = vmul.f32 %v532_v35, %v48_v32 }
  0xa3   :  { %v136_v52 = vmul.f32 %v533_v34, %v111_v33  ;;  %v206_v33 = vld [vmem:[#allocation2 + $0x88] sm:$0xff] }
  0xa4   :  { %v141_v43 = vadd.f32 %v133_v39, %v89_v37 }
  0xa5   :  { %v53_v36 = vpop.permute.xlu0 %52  ;;  %v144_v59 = vadd.f32 %v136_v52, %v92_v55  ;;  %v701_v55 = vmov 0.0|0.0  }
  0xa6   :  { %v90_v40 = vmul.f32 %v532_v35, %v53_v36 }
  0xa7   :  { %v152_v38 = vpop.permute.xlu1 %151 }
  0xa8   :  { %v189_v45 = vadd.f32 %v152_v38, %v141_v43  ;;  %v142_v46 = vadd.f32 %v134_v42, %v90_v40 }
  0xa9   :  { %v58_v41 = vpop.permute.xlu0 %57 }
  0xaa   :  { %v197_v50 = vmax.f32 %v189_v45, 0.0  ;;  %v91_v56 = vmul.f32 %v532_v35, %v58_v41 }
  0xab   :  { %v68_v44 = vpop.permute.xlu1 %67 }
  0xac   :  { %v143_v61 = vadd.f32 %v135_v54, %v91_v56  ;;  %v93_v8 = vmul.f32 %v532_v35, %v68_v44  ;;  %v336_v54 = vld [vmem:[#allocation2 + $0xc8] sm:$0xff]  ;;  %v703_v56 = vmov 0.0  }
  0xad   :  { %v157_v47 = vpop.permute.xlu0 %156 }
  0xae   :  { %v190_v48 = vadd.f32 %v157_v47, %v142_v46  ;;  %v145_v13 = vadd.f32 %v137_v7, %v93_v8 }
  0xaf   :  { %v73_v49 = vpop.permute.xlu1 %72 }
  0xb0   :  { %v198_v51 = vmax.f32 %v190_v48, 0.0  ;;  %v94_v6 = vmul.f32 %v532_v35, %v73_v49 }
  0xb1   :  { %v167_v58 = vpop.permute.xlu0 %166 }
  0xb2   :  { %v602_v53 = vpack.c.bf16 %v198_v51, %v197_v50  ;;  %v192_v60 = vadd.f32 %v167_v58, %v144_v59 }
  0xb4   :  { %v119_v57 = vpop.permute.xlu1 %118  ;;  %603 = vmatprep.subr.bf16.mxu0 %v602_v53  ;;  %v200_v0 = vmax.f32 %v192_v60, 0.0 }
  0xb5   :  { %605 = vmatpush3.bf16.msra.mxu0 %v602_v53  ;;  %v138_v5 = vmul.f32 %v533_v34, %v119_v57  ;;  %v177_v11 = vpop.permute.xlu0 %176 }
  0xb7   :  { %v146_v9 = vadd.f32 %v138_v5, %v94_v6 }
  0xb9   :  { %v162_v62 = vpop.permute.xlu1 %161  ;;  %v194_v12 = vadd.f32 %v177_v11, %v146_v9  ;;  %v216_v37 = vpop.permute.xlu0 %215 }
  0xba   :  { %v191_v63 = vadd.f32 %v162_v62, %v143_v61 }
  0xbb   :  { %v202_v18 = vmax.f32 %v194_v12, 0.0 }
  0xbc   :  { %v199_v1 = vmax.f32 %v191_v63, 0.0 }
  0xbd   :  { %v78_v2 = vpop.permute.xlu1 %77  ;;  %v226_v46 = vpop.permute.xlu0 %225 }
  0xbe   :  { %v606_v3 = vpack.c.bf16 %v200_v0, %v199_v1  ;;  %v95_v15 = vmul.f32 %v532_v35, %v78_v2  ;;  %v433_v2 = vld [vmem:[#allocation2 + $0xe0] sm:$0x3] }
  0xc0   :  { %607 = vmatprep.subr.bf16.mxu0 %v606_v3  ;;  %v147_v24 = vadd.f32 %v139_v17, %v95_v15 }
  0xc1   :  { %v83_v4 = vpop.permute.xlu1 %82  ;;  %609 = vmatpush3.bf16.msra.mxu0 %v606_v3  ;;  %v342_v59 = vpop.permute.xlu0 %341 }
  0xc2   :  { %v96_v22 = vmul.f32 %v532_v35, %v83_v4  ;;  %v335_v35 = vld [vmem:[#allocation2 + $0xc0] sm:$0xff] }
  0xc3   :  { %592 = vmatprep.mubr.msk.f32.mxu1 %vm349_vm1, %v335_v35  ;;  %v28_v4 = vld [vmem:[%s760_s1 + $0x2] sm:$0x3] }
  0xc5   :  { %v438_v3 = vpop.permute.xlu0 %437 }
  0xc6   :  { %v127_v10 = vpop.permute.xlu1 %126 }
  0xc7   :  { %v140_v19 = vmul.f32 %v533_v34, %v127_v10  ;;  %v208_v34 = vld [vmem:[#allocation2 + $0x98] sm:$0xff] }
  0xc9   :  { %v148_v26 = vadd.f32 %v140_v19, %v96_v22 }
  0xcb   :  { %v172_v14 = vpop.permute.xlu1 %171 }
  0xcc   :  { %v193_v16 = vadd.f32 %v172_v14, %v145_v13 }
  0xce   :  { %v201_v20 = vmax.f32 %v193_v16, 0.0 }
  0xcf   :  { %v182_v21 = vpop.permute.xlu1 %181 }
  0xd0   :  { %v610_v23 = vpack.c.bf16 %v202_v18, %v201_v20  ;;  %v195_v25 = vadd.f32 %v182_v21, %v147_v24 }
  0xd2   :  { %611 = vmatprep.subr.bf16.mxu0 %v610_v23  ;;  %v203_v29 = vmax.f32 %v195_v25, 0.0 }
  0xd3   :  { %v187_v27 = vpop.permute.xlu1 %186  ;;  %613 = vmatpush3.bf16.msra.mxu0 %v610_v23 }
  0xd4   :  { %v196_v28 = vadd.f32 %v187_v27, %v148_v26 }
  0xd6   :  { %v204_v31 = vmax.f32 %v196_v28, 0.0 }
  0xd7   :  { %v221_v36 = vpop.permute.xlu1 %220 }
  0xd8   :  { %v614_v32 = vpack.c.bf16 %v204_v31, %v203_v29 }
  0xda   :  { %615 = vmatprep.subr.bf16.mxu0 %v614_v32 }
  0xdb   :  { %617 = vmatpush3.bf16.msra.mxu0 %v614_v32  ;;  %v231_v43 = vpop.permute.xlu1 %230 }
  0xde   :  { %579 = vmatmul.mubr.msk.f32.vlgmr.msra.gmra.mrb[0].mxu0 %vm233_vm0, %v206_v33 }
  0xdf   :  { %581 = vmatprep.mubr.msk.f32.mxu0 %vm233_vm0, %v207_v30  ;;  %v347_v57 = vpop.permute.xlu1 %346 }
  0xe2   :  { %582 = vmatmul.mubr.msk.f32.gmra.mrb[2].mxu0 %vm233_vm0, %v208_v34 }
 0x1b1   :  { %v580_v38 = vpop.f32.mrb[0].mxu0 }
 0x1b2   :  { %v318_v39 = vadd.f32 %v580_v38, %v221_v36  ;;  %v312_v40 = vpop.f32.mrb[1].mxu0 }
 0x1b3   :  { %v313_v41 = vadd.f32 %v312_v40, %v216_v37 }
 0x1b4   :  { %v332_v42 = vmax.f32 %v318_v39, 0.0 }
 0x1b5   :  { %v331_v44 = vmax.f32 %v313_v41, 0.0  ;;  %v583_v45 = vpop.f32.mrb[2].mxu0 }
 0x1b6   :  { %v328_v47 = vadd.f32 %v583_v45, %v231_v43  ;;  %v322_v48 = vpop.f32.mrb[3].mxu0 }
 0x1b7   :  { %v323_v49 = vadd.f32 %v322_v48, %v226_v46  ;;  %v618_v50 = vpack.c.bf16 %v332_v42, %v331_v44 }
 0x1b8   :  { %v334_v51 = vmax.f32 %v328_v47, 0.0 }
 0x1b9   :  { %v333_v52 = vmax.f32 %v323_v49, 0.0  ;;  %619 = vmatprep.subr.bf16.mxu1 %v618_v50 }
 0x1ba   :  { %621 = vmatpush3.bf16.msra.mxu1 %v618_v50 }
 0x1bb   :  { %v622_v53 = vpack.c.bf16 %v334_v51, %v333_v52 }
 0x1bd   :  { %623 = vmatprep.subr.bf16.mxu1 %v622_v53 }
 0x1be   :  { %625 = vmatpush3.bf16.msra.mxu1 %v622_v53 }
 0x1bf   :  { %626 = vmatprep.subr.bf16.mxu1 %v701_v55 }
 0x1c1   :  { %593 = vmatmul.mubr.msk.f32.vlgmr.msra.gmra.mrb[0].mxu1 %vm349_vm1, %v336_v54 }
 0x1c2   :  { %599 = vmatprep.mubr.msk.f32.mxu1 %vm702_vm2, %v703_v56 }
 0x294   :  { %v594_v58 = vpop.f32.mrb[0].mxu1 }
 0x295   :  { %v428_v60 = vadd.f32 %v594_v58, %v347_v57  ;;  %v422_v61 = vpop.f32.mrb[1].mxu1 }
 0x296   :  { %v423_v62 = vadd.f32 %v422_v61, %v342_v59 }
 0x297   :  { %v432_v63 = vmax.f32 %v428_v60, 0.0 }
 0x298   :  { %v431_v0 = vmax.f32 %v423_v62, 0.0 }
 0x29a   :  { %v627_v1 = vpack.c.bf16 %v432_v63, %v431_v0 }
 0x29c   :  { %628 = vmatpush3.bf16.msra.mxu1 %v627_v1 }
 0x29f   :  { %600 = vmatmul.mubr.msk.f32.vlgmr.msra.gmra.mrb[2].mxu1 %vm440_vm3, %v433_v2 }
 0x372   :  { %v510_v5 = vpop.f32.mrb[2].mxu1 }
 0x373   :  { %v511_v6 = vadd.f32 %v510_v5, %v438_v3  ;;  %v601_v7 = vpop.f32.mrb[3].mxu1 }
 0x375   :  { %v514_v8 = vadd.f32 %v511_v6, %v28_v4 }
 0x377   :  { %516 = vst.msk [vmem:[#allocation5] sm:$0x3] %vm515_vm4, %v514_v8 }
 0x378   :  { %681 = shalt.err (!%p678_p12)
}
 0x379   :  { %s682_s1 = scalar_lea.hbm %s761_s2, 32 }
 0x37a   :  { %p683_p13 = scmp.ne.s32.totalorder %s761_s2, %s682_s1  ;;  %p686_p0 = scmp.lt.u32.totalorder %s682_s1, %s761_s2 }
 0x37c   :  { %p688_p1 = pnand %p686_p0, %p683_p13 }
 0x37e   :  { %691 = shalt.err (!%p688_p1)
}
 0x37f   :  { %526 = dma.vmem_to_hbm [thread:$0]  %s524_s29, 32, %s761_s2, [#allocation4]  }
 0x380   :  { %694 = dma.done.wait [#allocation4], 32  }
 0x381   :  { %695 = vsyncadd [#allocation4], 4294967264 }
 0x382   :  { %530 = vsyncpa [#allocation3], 1 }
 0x383   :  { %531 = vsyncpa [#allocation4], 1 }

</bundles_post_ra>
